<compile_context>
chip_gen: v7x
topology: tpu7x:2x2x1
jax: 0.10.0
libtpu: 0.0.40
codegen_flags: <defaults>
</compile_context>

<pallas_src>
import math

import jax
import jax.numpy as jnp
from jax import lax
from jax.experimental import pallas as pl
from jax.experimental.pallas import tpu as pltpu


# ----------------------------------------------------------------------------
# Kernel 1: hoisted input projection  gates_x = x2d @ W_ih + bias   (one tall matmul)
# ----------------------------------------------------------------------------
def _input_proj_kernel(x_ref, w_ref, b_ref, o_ref):
    o_ref[...] = (
        jnp.dot(x_ref[...], w_ref[...], preferred_element_type=jnp.float32)
        + b_ref[...]
    ).astype(o_ref.dtype)


def _pick_row_tile(rows, max_tile=1024):
    """Largest row tile <= max_tile that divides `rows` and is sublane aligned."""
    if rows <= max_tile:
        return rows
    for t in range(max_tile, 7, -1):
        if rows % t == 0 and t % 8 == 0:
            return t
    return rows  # fall back: single full block (always legal)


def _input_projection(x2d, w_ih, bias2d):
    rows, d_in = x2d.shape
    four_h = w_ih.shape[1]
    row_tile = _pick_row_tile(rows)

    grid_spec = pltpu.PrefetchScalarGridSpec(
        num_scalar_prefetch=0,
        grid=(rows // row_tile,),
        in_specs=[
            pl.BlockSpec((row_tile, d_in), lambda r: (r, 0)),
            pl.BlockSpec((d_in, four_h), lambda r: (0, 0)),
            pl.BlockSpec((1, four_h), lambda r: (0, 0)),
        ],
        out_specs=pl.BlockSpec((row_tile, four_h), lambda r: (r, 0)),
    )
    return pl.pallas_call(
        _input_proj_kernel,
        out_shape=jax.ShapeDtypeStruct((rows, four_h), jnp.float32),
        grid_spec=grid_spec,
        compiler_params=pltpu.CompilerParams(dimension_semantics=("parallel",)),
    )(x2d, w_ih, bias2d)


# ----------------------------------------------------------------------------
# Kernel 2: chunked recurrence. Each grid step processes T_CHUNK timesteps with
# only the h_prev @ W_hh matmul + gate nonlinearities on the serial path.
# ----------------------------------------------------------------------------
def _lstm_recurrence_kernel(gx_ref, whh_hbm, h0_ref, c0_ref,
                            out_ref, cN_ref,
                            h_scr, c_scr, whh_vmem):
    t_chunk = gx_ref.shape[0]
    H = h_scr.shape[-1]

    @pl.when(pl.program_id(0) == 0)
    def _():
        # Stage the recurrent weight once (single-buffered, resident for the
        # whole sequence) and initialize the h/c carries.
        pltpu.sync_copy(whh_hbm, whh_vmem)
        h_scr[...] = h0_ref[...]
        c_scr[...] = c0_ref[...]

    w_hh = whh_vmem[...]

    def step(s, carry):
        h_prev, c_prev = carry
        # gates_x already contains x@W_ih + bias; only the h-projection is serial.
        gates = gx_ref[s] + jnp.dot(h_prev, w_hh,
                                    preferred_element_type=jnp.float32)
        # NOTE: with H % 128 == 0 these slices are lane-aligned (free). At the
        # toy H=32 they cost a few lane shuffles; acceptable for the demo.
        i_g = jax.nn.sigmoid(gates[:, 0 * H:1 * H])
        f_g = jax.nn.sigmoid(gates[:, 1 * H:2 * H])
        g_g = jnp.tanh(gates[:, 2 * H:3 * H])
        o_g = jax.nn.sigmoid(gates[:, 3 * H:4 * H])

        c_new = f_g * c_prev + i_g * g_g
        h_new = o_g * jnp.tanh(c_new)

        out_ref[s] = h_new.astype(out_ref.dtype)
        return h_new, c_new

    h_fin, c_fin = lax.fori_loop(0, t_chunk, step,
                                 (h_scr[...], c_scr[...]), unroll=True)
    h_scr[...] = h_fin
    c_scr[...] = c_fin

    @pl.when(pl.program_id(0) == pl.num_programs(0) - 1)
    def _():
        cN_ref[...] = c_fin.astype(cN_ref.dtype)


def _pick_time_chunk(T, max_chunk=32):
    for c in range(min(T, max_chunk), 0, -1):
        if T % c == 0:
            return c
    return 1


def lstm_layer(x, w_ih, w_hh, bias, h0, c0, t_chunk=None):
    """One LSTM layer over the full sequence. x: (T, B, D). Returns (out, h_n, c_n)."""
    T, B, D = x.shape
    H = h0.shape[-1]
    four_h = 4 * H

    # (1) Hoisted input projection for all T timesteps at once.
    gates_x = _input_projection(x.reshape(T * B, D), w_ih, bias.reshape(1, four_h))
    gates_x = gates_x.reshape(T, B, four_h)

    if t_chunk is None:
        t_chunk = _pick_time_chunk(T)

    out_shapes = (
        jax.ShapeDtypeStruct((T, B, H), x.dtype),   # per-step h
        jax.ShapeDtypeStruct((B, H), x.dtype),      # final c
    )

    grid_spec = pltpu.PrefetchScalarGridSpec(
        num_scalar_prefetch=0,
        grid=(T // t_chunk,),
        in_specs=[
            pl.BlockSpec((t_chunk, B, four_h), lambda t: (t, 0, 0)),  # gates_x chunk
            pl.BlockSpec(memory_space=pl.ANY),                        # W_hh (manual stage)
            pl.BlockSpec((B, H), lambda t: (0, 0)),                   # h0
            pl.BlockSpec((B, H), lambda t: (0, 0)),                   # c0
        ],
        out_specs=[
            pl.BlockSpec((t_chunk, B, H), lambda t: (t, 0, 0)),       # h per step
            pl.BlockSpec((B, H), lambda t: (0, 0)),                   # final c
        ],
        scratch_shapes=[
            pltpu.VMEM((B, H), jnp.float32),          # h carry
            pltpu.VMEM((B, H), jnp.float32),          # c carry
            pltpu.VMEM((H, four_h), w_hh.dtype),      # staged W_hh (single-buffered)
        ],
    )

    out, c_n = pl.pallas_call(
        _lstm_recurrence_kernel,
        out_shape=out_shapes,
        grid_spec=grid_spec,
        compiler_params=pltpu.CompilerParams(
            dimension_semantics=("arbitrary",),       # time recurrence (serial carry)
        ),
    )(gates_x, w_hh, h0, c0)

    h_n = out[T - 1]                                  # final h == last output step
    return out, h_n, c_n


# ----------------------------------------------------------------------------
# Multi-layer wrapper + PyTorch-style init + pure-JAX reference
# ----------------------------------------------------------------------------
def init_lstm_params(key, input_size, hidden_size, num_layers):
    """PyTorch-style init: Uniform(-1/sqrt(H), 1/sqrt(H)) for all weights/biases."""
    params = []
    bound = 1.0 / math.sqrt(hidden_size)
    for layer in range(num_layers):
        d_in = input_size if layer == 0 else hidden_size
        key, k1, k2, k3 = jax.random.split(key, 4)
        w_ih = jax.random.uniform(k1, (d_in, 4 * hidden_size),
                                  minval=-bound, maxval=bound, dtype=jnp.float32)
        w_hh = jax.random.uniform(k2, (hidden_size, 4 * hidden_size),
                                  minval=-bound, maxval=bound, dtype=jnp.float32)
        bias = jax.random.uniform(k3, (4 * hidden_size,),
                                  minval=-bound, maxval=bound, dtype=jnp.float32)
        params.append((w_ih, w_hh, bias))
    return params


def lstm_forward(x, params, hidden_size, hx=None):
    """Multi-layer LSTM forward (eval mode: dropout is identity).

    x: (T, B, input_size). Returns (output (T, B, H), [(h_n, c_n)] per layer).
    """
    T, B, _ = x.shape
    num_layers = len(params)
    if hx is None:
        zeros = jnp.zeros((B, hidden_size), dtype=x.dtype)
        hx = [(zeros, zeros) for _ in range(num_layers)]

    layer_input = x
    new_hx = []
    for layer in range(num_layers):
        w_ih, w_hh, bias = params[layer]
        h0, c0 = hx[layer]
        layer_output, h_n, c_n = lstm_layer(layer_input, w_ih, w_hh, bias, h0, c0)
        layer_input = layer_output                    # dropout(p=0) == identity
        new_hx.append((h_n, c_n))
    return layer_output, new_hx


def lstm_forward_ref(x, params, hidden_size, hx=None):
    """Pure-JAX reference for verification."""
    T, B, _ = x.shape
    num_layers = len(params)
    if hx is None:
        zeros = jnp.zeros((B, hidden_size), dtype=x.dtype)
        hx = [(zeros, zeros) for _ in range(num_layers)]

    layer_input = x
    new_hx = []
    H = hidden_size
    for layer in range(num_layers):
        w_ih, w_hh, bias = params[layer]
        h, c = hx[layer]
        outs = []
        for t in range(T):
            gates = layer_input[t] @ w_ih + h @ w_hh + bias
            i = jax.nn.sigmoid(gates[:, 0 * H:1 * H])
            f = jax.nn.sigmoid(gates[:, 1 * H:2 * H])
            g = jnp.tanh(gates[:, 2 * H:3 * H])
            o = jax.nn.sigmoid(gates[:, 3 * H:4 * H])
            c = f * c + i * g
            h = o * jnp.tanh(c)
            outs.append(h)
        layer_input = jnp.stack(outs, 0)
        new_hx.append((h, c))
    return layer_input, new_hx


if __name__ == "__main__":
    SEQ, BATCH, INPUT_SIZE, HIDDEN_SIZE, NUM_LAYERS = 8, 8, 16, 32, 2

    key = jax.random.PRNGKey(0)
    key, kx = jax.random.split(key)
    x = jax.random.normal(kx, (SEQ, BATCH, INPUT_SIZE), dtype=jnp.float32)
    params = init_lstm_params(key, INPUT_SIZE, HIDDEN_SIZE, NUM_LAYERS)

    output, new_hx = lstm_forward(x, params, HIDDEN_SIZE)
    output = jax.block_until_ready(output)
    for h_n, c_n in new_hx:
        jax.block_until_ready(h_n)
        jax.block_until_ready(c_n)

    # Sanity-check against pure-JAX reference (all-f32 path, tight tolerance).
    ref_out, ref_hx = lstm_forward_ref(x, params, HIDDEN_SIZE)
    assert output.shape == (SEQ, BATCH, HIDDEN_SIZE)
    assert jnp.max(jnp.abs(output - ref_out)) < 5e-5
    for (h_n, c_n), (rh, rc) in zip(new_hx, ref_hx):
        assert jnp.max(jnp.abs(h_n - rh)) < 5e-5
        assert jnp.max(jnp.abs(c_n - rc)) < 5e-5

    print("KERNEL_OK")
</pallas_src>

<mosaic_0001>
module attributes {stable_mosaic.version = 11 : i64} {
  func.func @_input_proj_kernel(%arg0: i32, %arg1: memref<64x16xf32, #tpu.memory_space<vmem>>, %arg2: memref<16x128xf32, #tpu.memory_space<vmem>>, %arg3: memref<1x128xf32, #tpu.memory_space<vmem>>, %arg4: memref<64x128xf32, #tpu.memory_space<vmem>>) attributes {dimension_semantics = [#tpu.dimension_semantics<parallel>], iteration_bounds = array<i64: 1>, scalar_prefetch = 0 : i64, scratch_operands = 0 : i64, tpu.core_type = #tpu.core_type<tc>, window_params = [{transform_indices = @transform_0, window_bounds = array<i64: 64, 16>}, {pipeline_mode = #tpu.pipeline_mode<synchronous>, transform_indices = @transform_1, window_bounds = array<i64: 16, 128>}, {pipeline_mode = #tpu.pipeline_mode<synchronous>, transform_indices = @transform_2, window_bounds = array<i64: 1, 128>}, {transform_indices = @transform_3, window_bounds = array<i64: 64, 128>}]} {
    %c0 = arith.constant 0 : index
    %c0_0 = arith.constant 0 : index
    %0 = vector.load %arg1[%c0, %c0_0] : memref<64x16xf32, #tpu.memory_space<vmem>>, vector<64x16xf32>
    %c0_1 = arith.constant 0 : index
    %c0_2 = arith.constant 0 : index
    %1 = vector.load %arg2[%c0_1, %c0_2] : memref<16x128xf32, #tpu.memory_space<vmem>>, vector<16x128xf32>
    %cst = arith.constant dense<0.000000e+00> : vector<64x128xf32>
    %2 = tpu.matmul %0, %1, %cst {dimension_numbers = #tpu.dot_dimension_numbers<[1], [0], [0], [1], [0, 0, 1, 1], [], []>} : vector<64x16xf32>, vector<16x128xf32>, vector<64x128xf32> -> vector<64x128xf32>
    %c0_3 = arith.constant 0 : index
    %c0_4 = arith.constant 0 : index
    %3 = vector.load %arg3[%c0_3, %c0_4] : memref<1x128xf32, #tpu.memory_space<vmem>>, vector<1x128xf32>
    %4 = vector.broadcast %3 : vector<1x128xf32> to vector<64x128xf32>
    %5 = arith.addf %2, %4 : vector<64x128xf32>
    %c0_5 = arith.constant 0 : index
    %c0_6 = arith.constant 0 : index
    %6 = vector.load %arg4[%c0_5, %c0_6] : memref<64x128xf32, #tpu.memory_space<vmem>>, vector<64x128xf32>
    tpu.vector_store %arg4[%c0_5, %c0_6], %5 {strides = array<i32>} : memref<64x128xf32, #tpu.memory_space<vmem>>, vector<64x128xf32>,
    return
  }
  func.func @transform_0(%arg0: i32) -> (i32, i32) {
    %c0_i32 = arith.constant 0 : i32
    %c0_i32_0 = arith.constant 0 : i32
    return %arg0, %c0_i32 : i32, i32
  }
  func.func @transform_1(%arg0: i32) -> (i32, i32) {
    %c0_i32 = arith.constant 0 : i32
    %c0_i32_0 = arith.constant 0 : i32
    %c0_i32_1 = arith.constant 0 : i32
    return %c0_i32, %c0_i32_0 : i32, i32
  }
  func.func @transform_2(%arg0: i32) -> (i32, i32) {
    %c0_i32 = arith.constant 0 : i32
    %c0_i32_0 = arith.constant 0 : i32
    %c0_i32_1 = arith.constant 0 : i32
    return %c0_i32, %c0_i32_0 : i32, i32
  }
  func.func @transform_3(%arg0: i32) -> (i32, i32) {
    %c0_i32 = arith.constant 0 : i32
    %c0_i32_0 = arith.constant 0 : i32
    return %arg0, %c0_i32 : i32, i32
  }
}

</mosaic_0001>

<bundles_post_ra>
// kernel: tpu_custom_call.1
= control target key start
LH: loop header
LB: loop body
LE: loop exit
PB: predicated region body
PF: predicated region fallthrough
CT: control target
= control target key end

     0   :  { %vm32_vm0 = vcmask 130048   ;;  %s330_s0 = inlined_call_operand.vmem [shape: f32[64,16], index: 0, kind: input, shape index: {}]   ;;  %s331_s1 = inlined_call_operand.vmem [shape: f32[16,128], index: 1, kind: input, shape index: {}]   ;;  %s332_s2 = inlined_call_operand.vmem [shape: f32[1,128], index: 2, kind: input, shape index: {}]   ;;  %s333_s3 = inlined_call_operand.hbm [shape: f32[64,128], index: 3, kind: output, shape index: {}]  }
   0x1   :  { %v23_v0 = vld [vmem:[%s331_s1] sm:$0xff]  ;;  %v24_v1 = vld [vmem:[%s331_s1 + $0x8] sm:$0xff] }
   0x2   :  { %v15_v2 = vld [vmem:[%s330_s0] sm:$0xff]  ;;  %v221_v3 = vpack.c.bf16 %v24_v1, %v23_v0 }
   0x3   :  { %209 = vmatprep.mubr.msk.f32.mxu0 %vm32_vm0, %v15_v2  ;;  %v19_v4 = vld [vmem:[%s330_s0 + $0x20] sm:$0xff] }
   0x4   :  { %215 = vmatprep.mubr.msk.f32.mxu1 %vm32_vm0, %v19_v4  ;;  %222 = vmatprep.subr.bf16.mxu0 %v221_v3 }
   0x5   :  { %225 = vmatprep.subr.bf16.mxu1 %v221_v3 }
   0x6   :  { %8 = vsyncpa [#allocation3], 0  ;;  %224 = vmatpush3.bf16.msra.mxu0 %v221_v3  ;;  %226 = vmatpush3.bf16.msra.mxu1 %v221_v3  ;;  %v16_v5 = vld [vmem:[%s330_s0 + $0x8] sm:$0xff]  ;;  %v17_v7 = vld [vmem:[%s330_s0 + $0x10] sm:$0xff]  ;;  %s254_s6 = smov [#allocation2]  }
   0x7   :  { %v20_v6 = vld [vmem:[%s330_s0 + $0x28] sm:$0xff]  ;;  %v21_v8 = vld [vmem:[%s330_s0 + $0x30] sm:$0xff]  ;;  %v18_v9 = vld [vmem:[%s330_s0 + $0x18] sm:$0xff]  ;;  %s175_s7 = sshll.u32 %s254_s6, 4  ;;  %s176_s7 = int_to_ptr.vmem [resolvable:$true] %s175_s7 }
   0x8   :  { %v22_v10 = vld [vmem:[%s330_s0 + $0x38] sm:$0xff]  ;;  %v186_v11 = vld [vmem:[%s332_s2] ss:$0 sm:$0xff]  ;;  %s230_s0 = scalar_lea.vmem %s176_s7, 1024  ;;  %p235_p1 = scmp.lt.s32.totalorder %s176_s7, %s176_s7 }
   0x9   :  { %210 = vmatmul.mubr.msk.f32.vlgmr.msra.gmra.mrb[0].mxu0 %vm32_vm0, %v16_v5  ;;  %216 = vmatmul.mubr.msk.f32.vlgmr.msra.gmra.mrb[0].mxu1 %vm32_vm0, %v20_v6  ;;  %p231_p0 = scmp.ne.s32.totalorder %s176_s7, %s230_s0  ;;  %p236_p2 = scmp.lt.s32.totalorder %s230_s0, %s230_s0 }
   0xa   :  { %212 = vmatprep.mubr.msk.f32.mxu0 %vm32_vm0, %v17_v7  ;;  %218 = vmatprep.mubr.msk.f32.mxu1 %vm32_vm0, %v21_v8 }
   0xb   :  { %p237_p3 = por %p236_p2, %p235_p1 }
   0xd   :  { %213 = vmatmul.mubr.msk.f32.gmra.mrb[2].mxu0 %vm32_vm0, %v18_v9  ;;  %219 = vmatmul.mubr.msk.f32.gmra.mrb[2].mxu1 %vm32_vm0, %v22_v10  ;;  %p238_p4 = pnand %p237_p3, %p231_p0 }
  0xdc   :  { %v211_v12 = vpop.f32.mrb[0].mxu0  ;;  %v217_v13 = vpop.f32.mrb[0].mxu1 }
  0xdd   :  { %v129_v14 = vadd.f32 %v211_v12, %v186_v11  ;;  %v149_v15 = vadd.f32 %v217_v13, %v186_v11  ;;  %v123_v16 = vpop.f32.mrb[1].mxu0  ;;  %v143_v17 = vpop.f32.mrb[1].mxu1 }
  0xde   :  { %v124_v18 = vadd.f32 %v186_v11, %v123_v16  ;;  %v144_v19 = vadd.f32 %v186_v11, %v143_v17 }
  0xdf   :  { %163 = vst [vmem:[#allocation2 + $0x8] sm:$0xff] %v129_v14  ;;  %167 = vst [vmem:[#allocation2 + $0x28] sm:$0xff] %v149_v15 }
  0xe0   :  { %162 = vst [vmem:[#allocation2] sm:$0xff] %v124_v18  ;;  %166 = vst [vmem:[#allocation2 + $0x20] sm:$0xff] %v144_v19  ;;  %v214_v20 = vpop.f32.mrb[2].mxu0  ;;  %v220_v21 = vpop.f32.mrb[2].mxu1 }
  0xe1   :  { %v139_v22 = vadd.f32 %v214_v20, %v186_v11  ;;  %v159_v23 = vadd.f32 %v220_v21, %v186_v11  ;;  %v133_v24 = vpop.f32.mrb[3].mxu0  ;;  %v153_v25 = vpop.f32.mrb[3].mxu1 }
  0xe2   :  { %v134_v26 = vadd.f32 %v186_v11, %v133_v24  ;;  %v154_v27 = vadd.f32 %v186_v11, %v153_v25 }
  0xe3   :  { %165 = vst [vmem:[#allocation2 + $0x18] sm:$0xff] %v139_v22  ;;  %169 = vst [vmem:[#allocation2 + $0x38] sm:$0xff] %v159_v23 }
  0xe4   :  { %164 = vst [vmem:[#allocation2 + $0x10] sm:$0xff] %v134_v26  ;;  %168 = vst [vmem:[#allocation2 + $0x30] sm:$0xff] %v154_v27 }
  0xe5   :  { %241 = shalt.err (!%p238_p4)
}
  0xe6   :  { %s242_s9 = scalar_lea.hbm %s333_s3, 1024 }
  0xe7   :  { %p243_p5 = scmp.ne.s32.totalorder %s333_s3, %s242_s9  ;;  %p246_p6 = scmp.lt.u32.totalorder %s242_s9, %s333_s3 }
  0xe9   :  { %p248_p7 = pnand %p246_p6, %p243_p5 }
  0xeb   :  { %251 = shalt.err (!%p248_p7)
}
  0xec   :  { %s255_s14 = smov 128   ;;  %s256_s15 = smov 8  }
  0xed   :  { %181 = dma.vmem_to_hbm [thread:$0]  %s176_s7, 1024, %s333_s3, [#allocation3], %s255_s14, %s255_s14, %s256_s15  }
  0xee   :  { %252 = dma.done.wait [#allocation3], 1024  }
  0xef   :  { %253 = vsyncadd [#allocation3], 4294966272 }
  0xf0   :  { %185 = vsyncpa [#allocation3], 1 }

</bundles_post_ra>
